<compile_context>
chip_gen: v7x
topology: tpu7x:2x2x1
jax: 0.10.0
libtpu: 0.0.40
codegen_flags: <defaults>
</compile_context>

<pallas_src>
import functools

import jax
import jax.numpy as jnp
from jax.experimental import pallas as pl
from jax.experimental.pallas import tpu as pltpu

INPUT_SIZE = 32           # "input_size" ctor arg
H1, H2, H3, H4 = 80, 40, 20, 1


def _round_up(n, m):
    return ((n + m - 1) // m) * m


def _mlp_kernel(x_ref,
                w1_ref, b1_ref,
                w2_ref, b2_ref,
                w3_ref, b3_ref,
                w4_ref, b4_ref,
                out_ref):
    """Fused 4-layer MLP: bf16 MXU operands, f32 accumulation / bias / ReLU.

    Produces a lane-dense (1, bb) tile (batch on lanes) so stores are full
    vregs rather than masked (bb, 1) stores.
    """
    x = x_ref[...].astype(jnp.bfloat16)            # in-kernel cast (VPU); x read once

    h = jnp.dot(x, w1_ref[...], preferred_element_type=jnp.float32) + b1_ref[...]
    h = jnp.maximum(h, 0.0)                        # relu(fc1)   (bb, 80) f32

    h = jnp.dot(h.astype(jnp.bfloat16), w2_ref[...],
                preferred_element_type=jnp.float32) + b2_ref[...]
    h = jnp.maximum(h, 0.0)                        # relu(fc2)   (bb, 40) f32

    h = jnp.dot(h.astype(jnp.bfloat16), w3_ref[...],
                preferred_element_type=jnp.float32) + b3_ref[...]
    h = jnp.maximum(h, 0.0)                        # relu(fc3)   (bb, 20) f32

    # fc4 has N=1: compute it as a trans-B matmul (1,20) @ (bb,20)^T -> (1,bb)
    # so the result comes out lane-major directly (no masked (bb,1) store and
    # no XLU relayout of the activations).
    y = jax.lax.dot_general(
        w4_ref[...], h.astype(jnp.bfloat16),
        dimension_numbers=(((1,), (1,)), ((), ())),
        preferred_element_type=jnp.float32)        # (1, bb) f32
    out_ref[...] = (y + b4_ref[...]).astype(out_ref.dtype)


def _select_batch_tile(B, block_b):
    """Rows of x handled per grid step (static, trace-time)."""
    if B <= block_b:
        return B                                   # single step, full-array blocks
    # Sub-full tiles must keep the f32 x block (sublanes, %8) and the
    # lane-dense output block (lanes, %128) on native boundaries -> %128.
    bb = max(128, (block_b // 128) * 128)
    steps = pl.cdiv(B, bb)
    if steps > 1 and steps % 2 == 1:
        # Prefer an even grid length so the "parallel" batch axis splits
        # evenly across v7x's two TensorCores (harmless on 1-TC v5e/v6e).
        bb = max(128, _round_up(pl.cdiv(B, steps + 1), 128))
    return bb


@functools.partial(jax.jit, static_argnames=("block_b",))
def nn_forward(x, kparams, *, block_b=4096):
    """x: (B, INPUT_SIZE) float32 -> (B, 1) float32.

    kparams: output of prepare_params().  block_b≈4096 suits v5e/v6e;
    v7x (3.2 TB/s HBM) benefits from 8192-16384.
    """
    B, D = x.shape
    assert D == INPUT_SIZE
    w1, b1, w2, b2, w3, b3, w4, b4 = kparams

    eff_bb = _select_batch_tile(B, block_b)
    grid = (pl.cdiv(B, eff_bb),)

    def rep(shape):                                # grid-invariant full-array block
        return pl.BlockSpec(shape, lambda i: (0,) * len(shape))

    flops = 2 * B * (D * H1 + H1 * H2 + H2 * H3 + H3 * H4)
    bytes_accessed = (B * D * 4                                   # f32 x (read once)
                      + B * H4 * 4                                # f32 out
                      + (D * H1 + H1 * H2 + H2 * H3 + H3 * H4) * 2  # bf16 weights
                      + (H1 + H2 + H3 + H4) * 4)                  # f32 biases

    out = pl.pallas_call(
        _mlp_kernel,
        out_shape=jax.ShapeDtypeStruct((1, B), jnp.float32),      # lane-dense output
        grid=grid,
        in_specs=[
            pl.BlockSpec((eff_bb, D), lambda i: (i, 0)),          # x (batch-tiled, f32)
            rep((D, H1)),  rep((1, H1)),                          # fc1
            rep((H1, H2)), rep((1, H2)),                          # fc2
            rep((H2, H3)), rep((1, H3)),                          # fc3
            rep((1, H3)),  rep((1, H4)),                          # fc4 row + bias
        ],
        out_specs=pl.BlockSpec((1, eff_bb), lambda i: (0, i)),
        compiler_params=pltpu.CompilerParams(
            dimension_semantics=("parallel",),
            vmem_limit_bytes=32 * 1024 * 1024),
        cost_estimate=pl.CostEstimate(
            flops=flops, transcendentals=0, bytes_accessed=bytes_accessed),
    )(x, w1, b1, w2, b2, w3, b3, w4, b4)

    return out.reshape(B, 1)                       # tiny (4 B/row) layout fixup


def init_params(key):
    """f32 params matching nn.Linear shapes; weights stored pre-transposed (in, out)."""
    dims = [(INPUT_SIZE, H1), (H1, H2), (H2, H3), (H3, H4)]
    params = []
    for fan_in, fan_out in dims:
        key, kw, kb = jax.random.split(key, 3)
        bound = 1.0 / jnp.sqrt(fan_in)
        w = jax.random.uniform(kw, (fan_in, fan_out), jnp.float32, -bound, bound)
        b = jax.random.uniform(kb, (fan_out,), jnp.float32, -bound, bound)
        params.append((w, b))
    return params


def prepare_params(params):
    """One-time packing for the kernel (done at init, NOT per call):
    bf16 MXU weights, f32 (1, H) biases, fc4 weight as a bf16 (1, 20) row."""
    (w1, b1), (w2, b2), (w3, b3), (w4, b4) = params
    return (w1.astype(jnp.bfloat16), b1.reshape(1, H1).astype(jnp.float32),
            w2.astype(jnp.bfloat16), b2.reshape(1, H2).astype(jnp.float32),
            w3.astype(jnp.bfloat16), b3.reshape(1, H3).astype(jnp.float32),
            w4.reshape(1, H3).astype(jnp.bfloat16),
            b4.reshape(1, H4).astype(jnp.float32))


def nn_reference_f32(x, params):
    """Plain-JAX f32 reference of the PyTorch forward."""
    (w1, b1), (w2, b2), (w3, b3), (w4, b4) = params
    h = jnp.maximum(x @ w1 + b1, 0.0)
    h = jnp.maximum(h @ w2 + b2, 0.0)
    h = jnp.maximum(h @ w3 + b3, 0.0)
    return h @ w4 + b4


def nn_reference_bf16(x, params):
    """Reference emulating the kernel numerics (bf16 MXU operands, f32 accum)."""
    (w1, b1), (w2, b2), (w3, b3), (w4, b4) = params

    def mm(a, w):
        return jnp.dot(a.astype(jnp.bfloat16), w.astype(jnp.bfloat16),
                       preferred_element_type=jnp.float32)

    h = jnp.maximum(mm(x, w1) + b1, 0.0)
    h = jnp.maximum(mm(h, w2) + b2, 0.0)
    h = jnp.maximum(mm(h, w3) + b3, 0.0)
    return mm(h, w4) + b4


if __name__ == "__main__":
    key = jax.random.PRNGKey(0)
    key, kx = jax.random.split(key)

    B = 256
    x = jax.random.normal(kx, (B, INPUT_SIZE), dtype=jnp.float32)
    params = init_params(key)
    kparams = prepare_params(params)       # one-time bf16 weight packing

    # 1) default tile -> single-step grid (eff_bb = B)
    out1 = jax.block_until_ready(nn_forward(x, kparams))
    # 2) small tile -> 2-step grid; exercises the batch-tiled, lane-dense path
    out2 = jax.block_until_ready(nn_forward(x, kparams, block_b=128))

    assert out1.shape == (B, 1), out1.shape
    assert out2.shape == (B, 1), out2.shape

    ref_bf = nn_reference_bf16(x, params)   # kernel-matching numerics
    ref_32 = nn_reference_f32(x, params)    # pure-f32 PyTorch semantics
    assert jnp.allclose(out1, out2, atol=1e-5, rtol=1e-5), "tiling changed results"
    assert jnp.allclose(out1, ref_bf, atol=2e-3, rtol=2e-3), "mismatch vs bf16 reference"
    assert jnp.allclose(out2, ref_bf, atol=2e-3, rtol=2e-3), "mismatch vs bf16 reference"
    assert jnp.allclose(out1, ref_32, atol=1e-1, rtol=1e-1), "mismatch vs f32 reference"

    print("KERNEL_OK")
</pallas_src>

<mosaic_0001>
module attributes {stable_mosaic.version = 11 : i64} {
  func.func @_mlp_kernel(%arg0: i32, %arg1: memref<256x32xf32, #tpu.memory_space<vmem>>, %arg2: memref<32x80xbf16, #tpu.memory_space<vmem>>, %arg3: memref<1x80xf32, #tpu.memory_space<vmem>>, %arg4: memref<80x40xbf16, #tpu.memory_space<vmem>>, %arg5: memref<1x40xf32, #tpu.memory_space<vmem>>, %arg6: memref<40x20xbf16, #tpu.memory_space<vmem>>, %arg7: memref<1x20xf32, #tpu.memory_space<vmem>>, %arg8: memref<1x20xbf16, #tpu.memory_space<vmem>>, %arg9: memref<1x1xf32, #tpu.memory_space<vmem>>, %arg10: memref<1x256xf32, #tpu.memory_space<vmem>>) attributes {dimension_semantics = [#tpu.dimension_semantics<parallel>], iteration_bounds = array<i64: 1>, scalar_prefetch = 0 : i64, scratch_operands = 0 : i64, tpu.core_type = #tpu.core_type<tc>, window_params = [{transform_indices = @transform_0, window_bounds = array<i64: 256, 32>}, {pipeline_mode = #tpu.pipeline_mode<synchronous>, transform_indices = @transform_1, window_bounds = array<i64: 32, 80>}, {pipeline_mode = #tpu.pipeline_mode<synchronous>, transform_indices = @transform_2, window_bounds = array<i64: 1, 80>}, {pipeline_mode = #tpu.pipeline_mode<synchronous>, transform_indices = @transform_3, window_bounds = array<i64: 80, 40>}, {pipeline_mode = #tpu.pipeline_mode<synchronous>, transform_indices = @transform_4, window_bounds = array<i64: 1, 40>}, {pipeline_mode = #tpu.pipeline_mode<synchronous>, transform_indices = @transform_5, window_bounds = array<i64: 40, 20>}, {pipeline_mode = #tpu.pipeline_mode<synchronous>, transform_indices = @transform_6, window_bounds = array<i64: 1, 20>}, {pipeline_mode = #tpu.pipeline_mode<synchronous>, transform_indices = @transform_7, window_bounds = array<i64: 1, 20>}, {pipeline_mode = #tpu.pipeline_mode<synchronous>, transform_indices = @transform_8, window_bounds = array<i64: 1, 1>}, {transform_indices = @transform_9, window_bounds = array<i64: 1, 256>}]} {
    %c0 = arith.constant 0 : index
    %c0_0 = arith.constant 0 : index
    %0 = vector.load %arg1[%c0, %c0_0] : memref<256x32xf32, #tpu.memory_space<vmem>>, vector<256x32xf32>
    %1 = arith.truncf %0 : vector<256x32xf32> to vector<256x32xbf16>
    %c0_1 = arith.constant 0 : index
    %c0_2 = arith.constant 0 : index
    %2 = vector.load %arg2[%c0_1, %c0_2] : memref<32x80xbf16, #tpu.memory_space<vmem>>, vector<32x80xbf16>
    %cst = arith.constant dense<0.000000e+00> : vector<256x80xf32>
    %3 = tpu.matmul %1, %2, %cst {dimension_numbers = #tpu.dot_dimension_numbers<[1], [0], [0], [1], [0, 0, 1, 1], [], []>} : vector<256x32xbf16>, vector<32x80xbf16>, vector<256x80xf32> -> vector<256x80xf32>
    %c0_3 = arith.constant 0 : index
    %c0_4 = arith.constant 0 : index
    %4 = vector.load %arg3[%c0_3, %c0_4] : memref<1x80xf32, #tpu.memory_space<vmem>>, vector<1x80xf32>
    %5 = vector.broadcast %4 : vector<1x80xf32> to vector<256x80xf32>
    %6 = arith.addf %3, %5 : vector<256x80xf32>
    %cst_5 = arith.constant 0.000000e+00 : f32
    %7 = vector.broadcast %cst_5 : f32 to vector<256x80xf32>
    %8 = arith.maximumf %6, %7 : vector<256x80xf32>
    %9 = arith.truncf %8 : vector<256x80xf32> to vector<256x80xbf16>
    %c0_6 = arith.constant 0 : index
    %c0_7 = arith.constant 0 : index
    %10 = vector.load %arg4[%c0_6, %c0_7] : memref<80x40xbf16, #tpu.memory_space<vmem>>, vector<80x40xbf16>
    %cst_8 = arith.constant dense<0.000000e+00> : vector<256x40xf32>
    %11 = tpu.matmul %9, %10, %cst_8 {dimension_numbers = #tpu.dot_dimension_numbers<[1], [0], [0], [1], [0, 0, 1, 1], [], []>} : vector<256x80xbf16>, vector<80x40xbf16>, vector<256x40xf32> -> vector<256x40xf32>
    %c0_9 = arith.constant 0 : index
    %c0_10 = arith.constant 0 : index
    %12 = vector.load %arg5[%c0_9, %c0_10] : memref<1x40xf32, #tpu.memory_space<vmem>>, vector<1x40xf32>
    %13 = vector.broadcast %12 : vector<1x40xf32> to vector<256x40xf32>
    %14 = arith.addf %11, %13 : vector<256x40xf32>
    %cst_11 = arith.constant 0.000000e+00 : f32
    %15 = vector.broadcast %cst_11 : f32 to vector<256x40xf32>
    %16 = arith.maximumf %14, %15 : vector<256x40xf32>
    %17 = arith.truncf %16 : vector<256x40xf32> to vector<256x40xbf16>
    %c0_12 = arith.constant 0 : index
    %c0_13 = arith.constant 0 : index
    %18 = vector.load %arg6[%c0_12, %c0_13] : memref<40x20xbf16, #tpu.memory_space<vmem>>, vector<40x20xbf16>
    %cst_14 = arith.constant dense<0.000000e+00> : vector<256x20xf32>
    %19 = tpu.matmul %17, %18, %cst_14 {dimension_numbers = #tpu.dot_dimension_numbers<[1], [0], [0], [1], [0, 0, 1, 1], [], []>} : vector<256x40xbf16>, vector<40x20xbf16>, vector<256x20xf32> -> vector<256x20xf32>
    %c0_15 = arith.constant 0 : index
    %c0_16 = arith.constant 0 : index
    %20 = vector.load %arg7[%c0_15, %c0_16] : memref<1x20xf32, #tpu.memory_space<vmem>>, vector<1x20xf32>
    %21 = vector.broadcast %20 : vector<1x20xf32> to vector<256x20xf32>
    %22 = arith.addf %19, %21 : vector<256x20xf32>
    %cst_17 = arith.constant 0.000000e+00 : f32
    %23 = vector.broadcast %cst_17 : f32 to vector<256x20xf32>
    %24 = arith.maximumf %22, %23 : vector<256x20xf32>
    %c0_18 = arith.constant 0 : index
    %c0_19 = arith.constant 0 : index
    %25 = vector.load %arg8[%c0_18, %c0_19] : memref<1x20xbf16, #tpu.memory_space<vmem>>, vector<1x20xbf16>
    %26 = arith.truncf %24 : vector<256x20xf32> to vector<256x20xbf16>
    %cst_20 = arith.constant dense<0.000000e+00> : vector<1x256xf32>
    %27 = tpu.matmul %25, %26, %cst_20 {dimension_numbers = #tpu.dot_dimension_numbers<[1], [1], [0], [0], [0, 0, 1, 0], [], []>} : vector<1x20xbf16>, vector<256x20xbf16>, vector<1x256xf32> -> vector<1x256xf32>
    %c0_21 = arith.constant 0 : index
    %c0_22 = arith.constant 0 : index
    %28 = vector.load %arg9[%c0_21, %c0_22] : memref<1x1xf32, #tpu.memory_space<vmem>>, vector<1x1xf32>
    %29 = vector.broadcast %28 : vector<1x1xf32> to vector<1x256xf32>
    %30 = arith.addf %27, %29 : vector<1x256xf32>
    %c0_23 = arith.constant 0 : index
    %c0_24 = arith.constant 0 : index
    %31 = vector.load %arg10[%c0_23, %c0_24] : memref<1x256xf32, #tpu.memory_space<vmem>>, vector<1x256xf32>
    tpu.vector_store %arg10[%c0_23, %c0_24], %30 {strides = array<i32>} : memref<1x256xf32, #tpu.memory_space<vmem>>, vector<1x256xf32>,
    return
  }
  func.func @transform_0(%arg0: i32) -> (i32, i32) {
    %c0_i32 = arith.constant 0 : i32
    %c0_i32_0 = arith.constant 0 : i32
    return %arg0, %c0_i32 : i32, i32
  }
  func.func @transform_1(%arg0: i32) -> (i32, i32) {
    %c0_i32 = arith.constant 0 : i32
    %c0_i32_0 = arith.constant 0 : i32
    %c0_i32_1 = arith.constant 0 : i32
    return %c0_i32, %c0_i32_0 : i32, i32
  }
  func.func @transform_2(%arg0: i32) -> (i32, i32) {
    %c0_i32 = arith.constant 0 : i32
    %c0_i32_0 = arith.constant 0 : i32
    %c0_i32_1 = arith.constant 0 : i32
    return %c0_i32, %c0_i32_0 : i32, i32
  }
  func.func @transform_3(%arg0: i32) -> (i32, i32) {
    %c0_i32 = arith.constant 0 : i32
    %c0_i32_0 = arith.constant 0 : i32
    %c0_i32_1 = arith.constant 0 : i32
    return %c0_i32, %c0_i32_0 : i32, i32
  }
  func.func @transform_4(%arg0: i32) -> (i32, i32) {
    %c0_i32 = arith.constant 0 : i32
    %c0_i32_0 = arith.constant 0 : i32
    %c0_i32_1 = arith.constant 0 : i32
    return %c0_i32, %c0_i32_0 : i32, i32
  }
  func.func @transform_5(%arg0: i32) -> (i32, i32) {
    %c0_i32 = arith.constant 0 : i32
    %c0_i32_0 = arith.constant 0 : i32
    %c0_i32_1 = arith.constant 0 : i32
    return %c0_i32, %c0_i32_0 : i32, i32
  }
  func.func @transform_6(%arg0: i32) -> (i32, i32) {
    %c0_i32 = arith.constant 0 : i32
    %c0_i32_0 = arith.constant 0 : i32
    %c0_i32_1 = arith.constant 0 : i32
    return %c0_i32, %c0_i32_0 : i32, i32
  }
  func.func @transform_7(%arg0: i32) -> (i32, i32) {
    %c0_i32 = arith.constant 0 : i32
    %c0_i32_0 = arith.constant 0 : i32
    %c0_i32_1 = arith.constant 0 : i32
    return %c0_i32, %c0_i32_0 : i32, i32
  }
  func.func @transform_8(%arg0: i32) -> (i32, i32) {
    %c0_i32 = arith.constant 0 : i32
    %c0_i32_0 = arith.constant 0 : i32
    %c0_i32_1 = arith.constant 0 : i32
    return %c0_i32, %c0_i32_0 : i32, i32
  }
  func.func @transform_9(%arg0: i32) -> (i32, i32) {
    %c0_i32 = arith.constant 0 : i32
    %c0_i32_0 = arith.constant 0 : i32
    return %c0_i32, %arg0 : i32, i32
  }
}

</mosaic_0001>

<bundles_post_ra>
// kernel: nn_forward.1
= control target key start
LH: loop header
LB: loop body
LE: loop exit
PB: predicated region body
PF: predicated region fallthrough
CT: control target
= control target key end

     0   :  { %s1816_s0 = inlined_call_operand.vmem [shape: f32[256,32], index: 0, kind: input, shape index: {}]   ;;  %s1817_s1 = inlined_call_operand.vmem [shape: bf16[32,80], index: 1, kind: input, shape index: {}]   ;;  %s1818_s2 = inlined_call_operand.vmem [shape: f32[1,80], index: 2, kind: input, shape index: {}]   ;;  %s1819_s3 = inlined_call_operand.vmem [shape: bf16[80,40], index: 3, kind: input, shape index: {}]   ;;  %s1820_s4 = inlined_call_operand.vmem [shape: f32[1,40], index: 4, kind: input, shape index: {}]   ;;  %s1821_s5 = inlined_call_operand.vmem [shape: bf16[40,20], index: 5, kind: input, shape index: {}]   ;;  %s1822_s6 = inlined_call_operand.vmem [shape: f32[1,20], index: 6, kind: input, shape index: {}]   ;;  %s1823_s7 = inlined_call_operand.vmem [shape: bf16[1,20], index: 7, kind: input, shape index: {}]   ;;  %s1824_s8 = inlined_call_operand.<no memory space> [shape: f32[1,1], index: 8, kind: input, shape index: {}]   ;;  %s1825_s9 = inlined_call_operand.hbm [shape: f32[1,256], index: 9, kind: output, shape index: {}]  }
   0x1   :  { %v14_v0 = vstv %s1824_s8 }
   0x2   :  { %15 = vst [vmem:[#allocation2] sm:$0x1] %v14_v0 }
   0x3   :  { %v1371_v1 = vld [vmem:[%s1817_s1] sm:$0xff]   ;;  %v1372_v2 = vld [vmem:[%s1817_s1 + $0x8] sm:$0xff]   ;;  %vm107_vm0 = vcmask 261120   ;;  %v38_v6 = vld [vmem:[%s1816_s0 + $0x10] sm:$0xff] }
   0x4   :  { %1238 = vmatprep.subr.bf16.mxu0 %v1371_v1  ;;  %v36_v3 = vld [vmem:[%s1816_s0] sm:$0xff]  ;;  %v37_v4 = vld [vmem:[%s1816_s0 + $0x8] sm:$0xff]  ;;  %1354 = vmatprep.subr.bf16.mxu1 %v1371_v1  ;;  %v39_v7 = vld [vmem:[%s1816_s0 + $0x18] sm:$0xff] }
   0x5   :  { %1239 = vmatpush3.bf16.msra.mxu0 %v1371_v1  ;;  %v68_v5 = vpack.c.bf16 %v37_v4, %v36_v3  ;;  %1356 = vmatpush3.bf16.msra.mxu1 %v1371_v1  ;;  %v40_v8 = vld [vmem:[%s1816_s0 + $0x20] sm:$0xff]  ;;  %v41_v9 = vld [vmem:[%s1816_s0 + $0x28] sm:$0xff]  ;;  %v69_v10 = vpack.c.bf16 %v39_v7, %v38_v6  ;;  %v58_v14 = vld [vmem:[%s1816_s0 + $0xb0] sm:$0xff] }
   0x6   :  { %1240 = vmatprep.subr.bf16.mxu0 %v1372_v2  ;;  %1355 = vmatprep.subr.bf16.mxu1 %v1372_v2  ;;  %v70_v11 = vpack.c.bf16 %v41_v9, %v40_v8  ;;  %v56_v12 = vld [vmem:[%s1816_s0 + $0xa0] sm:$0xff]  ;;  %v57_v13 = vld [vmem:[%s1816_s0 + $0xa8] sm:$0xff]  ;;  %v59_v15 = vld [vmem:[%s1816_s0 + $0xb8] sm:$0xff] }
   0x7   :  { %1242 = vmatprep.mubr.msk.bf16.mxu0 %vm107_vm0, %v68_v5  ;;  %v42_v16 = vld [vmem:[%s1816_s0 + $0x30] sm:$0xff]  ;;  %v78_v17 = vpack.c.bf16 %v57_v13, %v56_v12  ;;  %v79_v18 = vpack.c.bf16 %v59_v15, %v58_v14  ;;  %v60_v19 = vld [vmem:[%s1816_s0 + $0xc0] sm:$0xff]  ;;  %v61_v20 = vld [vmem:[%s1816_s0 + $0xc8] sm:$0xff] }
   0x8   :  { %v43_v21 = vld [vmem:[%s1816_s0 + $0x38] sm:$0xff]  ;;  %v44_v22 = vld [vmem:[%s1816_s0 + $0x40] sm:$0xff]  ;;  %v45_v23 = vld [vmem:[%s1816_s0 + $0x48] sm:$0xff]  ;;  %v80_v24 = vpack.c.bf16 %v61_v20, %v60_v19 }
   0x9   :  { %1241 = vmatpush3.bf16.msra.mxu0 %v1372_v2  ;;  %1357 = vmatpush3.bf16.msra.mxu1 %v1372_v2  ;;  %v62_v25 = vld [vmem:[%s1816_s0 + $0xd0] sm:$0xff]  ;;  %v63_v26 = vld [vmem:[%s1816_s0 + $0xd8] sm:$0xff]  ;;  %v64_v27 = vld [vmem:[%s1816_s0 + $0xe0] sm:$0xff]  ;;  %v71_v30 = vpack.c.bf16 %v43_v21, %v42_v16  ;;  %v72_v32 = vpack.c.bf16 %v45_v23, %v44_v22 }
   0xa   :  { %1262 = vmatprep.mubr.msk.bf16.mxu1 %vm107_vm0, %v78_v17  ;;  %v65_v28 = vld [vmem:[%s1816_s0 + $0xe8] sm:$0xff]  ;;  %v1373_v29 = vld [vmem:[%s1819_s3] sm:$0xff]   ;;  %v1375_v33 = vld [vmem:[%s1819_s3 + $0x10] sm:$0xff]   ;;  %v81_v34 = vpack.c.bf16 %v63_v26, %v62_v25 }
   0xb   :  { %v1374_v31 = vld [vmem:[%s1819_s3 + $0x8] sm:$0xff]   ;;  %1274 = vmatprep.subr.bf16.mxu1 %v1373_v29  ;;  %v82_v35 = vpack.c.bf16 %v65_v28, %v64_v27 }
   0xc   :  { %1243 = vmatmul.mubr.msk.bf16.vlgmr.msra.gmra.mrb[0].mxu0 %vm107_vm0, %v69_v10  ;;  %1263 = vmatmul.mubr.msk.bf16.vlgmr.msra.gmra.mrb[0].mxu1 %vm107_vm0, %v79_v18 }
   0xd   :  { %1246 = vmatprep.mubr.msk.bf16.mxu0 %vm107_vm0, %v70_v11  ;;  %1266 = vmatprep.mubr.msk.bf16.mxu1 %vm107_vm0, %v80_v24 }
   0xe   :  { %1275 = vmatpush3.bf16.msra.mxu1 %v1373_v29 }
   0xf   :  { %1276 = vmatprep.subr.bf16.mxu1 %v1374_v31 }
  0x14   :  { %1247 = vmatmul.mubr.msk.bf16.gmra.mrb[4].mxu0 %vm107_vm0, %v71_v30 }
  0x15   :  { %16 = vsyncpa [#allocation4], 0  ;;  %1250 = vmatprep.mubr.msk.bf16.mxu0 %vm107_vm0, %v72_v32  ;;  %v46_v36 = vld [vmem:[%s1816_s0 + $0x50] sm:$0xff]  ;;  %v47_v37 = vld [vmem:[%s1816_s0 + $0x58] sm:$0xff]  ;;  %1277 = vmatpush3.bf16.msra.mxu1 %v1374_v31  ;;  %vm746_vm1 = vcmask 1043456   ;;  %vm412_vm2 = vcmask 654336  }
  0x16   :  { %v48_v38 = vld [vmem:[%s1816_s0 + $0x60] sm:$0xff]  ;;  %v49_v39 = vld [vmem:[%s1816_s0 + $0x68] sm:$0xff]  ;;  %1267 = vmatmul.mubr.msk.bf16.gmra.mrb[4].mxu1 %vm107_vm0, %v81_v34  ;;  %1278 = vmatprep.subr.bf16.mxu1 %v1375_v33  ;;  %v73_v40 = vpack.c.bf16 %v47_v37, %v46_v36  ;;  %v66_v41 = vld [vmem:[%s1816_s0 + $0xf0] sm:$0xff]  ;;  %vm697_vm3 = vcmask 326656   ;;  %vm970_vm4 = vcmask 162816  }
  0x17   :  { %1270 = vmatprep.mubr.msk.bf16.mxu1 %vm107_vm0, %v82_v35  ;;  %v67_v42 = vld [vmem:[%s1816_s0 + $0xf8] sm:$0xff]  ;;  %v74_v43 = vpack.c.bf16 %v49_v39, %v48_v38  ;;  %v50_v45 = vld [vmem:[%s1816_s0 + $0x70] sm:$0xff]  ;;  %v52_v47 = vld [vmem:[%s1816_s0 + $0x80] sm:$0xff] }
  0x18   :  { %v83_v44 = vpack.c.bf16 %v67_v42, %v66_v41  ;;  %v51_v46 = vld [vmem:[%s1816_s0 + $0x78] sm:$0xff]  ;;  %v53_v48 = vld [vmem:[%s1816_s0 + $0x88] sm:$0xff]  ;;  %v54_v51 = vld [vmem:[%s1816_s0 + $0x90] sm:$0xff] }
  0x19   :  { %1279 = vmatpush3.bf16.msra.mxu1 %v1375_v33  ;;  %v75_v49 = vpack.c.bf16 %v51_v46, %v50_v45  ;;  %v76_v50 = vpack.c.bf16 %v53_v48, %v52_v47  ;;  %v55_v52 = vld [vmem:[%s1816_s0 + $0x98] sm:$0xff]  ;;  %v1377_v55 = vld [vmem:[%s1819_s3 + $0x20] sm:$0xff]   ;;  %v1379_v57 = vld [vmem:[%s1821_s5 + $0x8] sm:$0xff]  }
  0x1a   :  { %v77_v53 = vpack.c.bf16 %v55_v52, %v54_v51  ;;  %v1376_v54 = vld [vmem:[%s1819_s3 + $0x18] sm:$0xff]   ;;  %v1378_v56 = vld [vmem:[%s1821_s5] sm:$0xff]   ;;  %v1380_v58 = vld [vmem:[%s1821_s5 + $0x10] ss:$0 sps:$4 sm:$0xff]  }
  0x1b   :  { %1280 = vmatprep.subr.bf16.mxu1 %v1376_v54  ;;  %1316 = vmatprep.subr.bf16.mxu0 %v1378_v56  ;;  %v748_v59 = vsel %vm746_vm1, %v1380_v58, 0  ;;  %v1606_v60 = vld [vmem:[%s1818_s2] ss:$0 sm:$0xff] }
  0x1c   :  { %1251 = vmatmul.mubr.msk.bf16.gmra.mrb[8].mxu0 %vm107_vm0, %v73_v40 }
  0x1d   :  { %1254 = vmatprep.mubr.msk.bf16.mxu0 %vm107_vm0, %v74_v43  ;;  %1281 = vmatpush3.bf16.msra.mxu1 %v1376_v54 }
  0x1e   :  { %1271 = vmatmul.mubr.msk.bf16.gmra.mrb[8].mxu1 %vm107_vm0, %v83_v44  ;;  %1282 = vmatprep.subr.bf16.mxu1 %v1377_v55 }
  0x1f   :  { %1317 = vmatpush3.bf16.msra.mxu0 %v1378_v56 }
  0x20   :  { %1318 = vmatprep.subr.bf16.mxu0 %v1379_v57 }
  0x21   :  { %1283 = vmatpush3.bf16.msra.mxu1 %v1377_v55 }
  0x23   :  { %1319 = vmatpush3.bf16.msra.mxu0 %v1379_v57 }
  0x24   :  { %1255 = vmatmul.mubr.msk.bf16.gmra.mrb[12].mxu0 %vm107_vm0, %v75_v49  ;;  %1358 = vmatprep.subr.msk.bf16.mxu0 %vm746_vm1, %v1380_v58 }
  0x25   :  { %1258 = vmatprep.mubr.msk.bf16.mxu0 %vm107_vm0, %v76_v50 }
  0x27   :  { %1321 = vmatpush3.bf16.msra.mxu0 %v748_v59 }
  0x2c   :  { %1259 = vmatmul.mubr.msk.bf16.gmra.mrb[16].mxu0 %vm107_vm0, %v77_v53 }
  0xdf   :  { %v1244_v61 = vpop.f32.mrb[0].mxu0  ;;  %v1264_v4 = vpop.f32.mrb[0].mxu1 }
  0xe0   :  { %v199_v62 = vadd.f32 %v1244_v61, %v1606_v60  ;;  %v190_v63 = vpop.f32.mrb[1].mxu0  ;;  %v279_v6 = vadd.f32 %v1264_v4, %v1606_v60  ;;  %v270_v7 = vpop.f32.mrb[1].mxu1 }
  0xe1   :  { %v191_v0 = vadd.f32 %v1606_v60, %v190_v63  ;;  %v1245_v1 = vpop.f32.mrb[2].mxu0  ;;  %v271_v10 = vadd.f32 %v1606_v60, %v270_v7  ;;  %v1265_v11 = vpop.f32.mrb[2].mxu1 }
  0xe2   :  { %v202_v2 = vadd.f32 %v1245_v1, %v1606_v60  ;;  %v193_v3 = vpop.f32.mrb[3].mxu0  ;;  %v319_v8 = vmax.f32 %v199_v62, 0.0  ;;  %v339_v14 = vmax.f32 %v279_v6, 0.0  ;;  %v282_v15 = vadd.f32 %v1265_v11, %v1606_v60  ;;  %v273_v16 = vpop.f32.mrb[3].mxu1 }
  0xe3   :  { %v194_v5 = vadd.f32 %v1606_v60, %v193_v3  ;;  %v317_v12 = vmax.f32 %v191_v0, 0.0  ;;  %v337_v18 = vmax.f32 %v271_v10, 0.0  ;;  %v274_v19 = vadd.f32 %v1606_v60, %v273_v16 }
  0xe4   :  { %v320_v9 = vmax.f32 %v202_v2, 0.0  ;;  %v340_v22 = vmax.f32 %v282_v15, 0.0 }
  0xe5   :  { %v318_v13 = vmax.f32 %v194_v5, 0.0  ;;  %v338_v25 = vmax.f32 %v274_v19, 0.0 }
  0xe6   :  { %v350_v17 = vpack.c.bf16 %v320_v9, %v319_v8  ;;  %v1619_v28 = vpack.c.bf16 %v340_v22, %v339_v14 }
  0xe7   :  { %v349_v20 = vpack.c.bf16 %v318_v13, %v317_v12  ;;  %v1248_v21 = vpop.f32.mrb[4].mxu0  ;;  %v1623_v31 = vpack.c.bf16 %v338_v25, %v337_v18 }
  0xe8   :  { %v215_v23 = vadd.f32 %v1248_v21, %v1606_v60  ;;  %v206_v24 = vpop.f32.mrb[5].mxu0 }
  0xe9   :  { %v207_v26 = vadd.f32 %v1606_v60, %v206_v24  ;;  %v1249_v27 = vpop.f32.mrb[6].mxu0  ;;  %1284 = vmatprep.mubr.msk.bf16.mxu1 %vm412_vm2, %v349_v20  ;;  %v1268_v32 = vpop.f32.mrb[4].mxu1 }
  0xea   :  { %v218_v29 = vadd.f32 %v1249_v27, %v1606_v60  ;;  %v209_v30 = vpop.f32.mrb[7].mxu0  ;;  %1285 = vmatmul.mubr.msk.bf16.vlgmr.msra.gmra.mrb[12].mxu1 %vm412_vm2, %v350_v17  ;;  %v295_v34 = vadd.f32 %v1268_v32, %v1606_v60  ;;  %v286_v35 = vpop.f32.mrb[5].mxu1  ;;  %v323_v36 = vmax.f32 %v215_v23, 0.0 }
  0xeb   :  { %v210_v33 = vadd.f32 %v1606_v60, %v209_v30  ;;  %v287_v38 = vadd.f32 %v1606_v60, %v286_v35  ;;  %v1269_v39 = vpop.f32.mrb[6].mxu1  ;;  %v321_v40 = vmax.f32 %v207_v26, 0.0 }
  0xec   :  { %v324_v37 = vmax.f32 %v218_v29, 0.0  ;;  %v343_v42 = vmax.f32 %v295_v34, 0.0  ;;  %v298_v43 = vadd.f32 %v1269_v39, %v1606_v60  ;;  %v289_v44 = vpop.f32.mrb[7].mxu1 }
  0xed   :  { %v322_v41 = vmax.f32 %v210_v33, 0.0  ;;  %v341_v46 = vmax.f32 %v287_v38, 0.0  ;;  %v290_v47 = vadd.f32 %v1606_v60, %v289_v44 }
  0xee   :  { %v352_v45 = vpack.c.bf16 %v324_v37, %v323_v36  ;;  %v344_v50 = vmax.f32 %v298_v43, 0.0 }
  0xef   :  { %v351_v48 = vpack.c.bf16 %v322_v41, %v321_v40  ;;  %v1252_v49 = vpop.f32.mrb[8].mxu0  ;;  %v342_v53 = vmax.f32 %v290_v47, 0.0 }
  0xf0   :  { %v231_v51 = vadd.f32 %v1252_v49, %v1606_v60  ;;  %v222_v52 = vpop.f32.mrb[9].mxu0  ;;  %v1633_v56 = vpack.c.bf16 %v344_v50, %v343_v42 }
  0xf1   :  { %v223_v54 = vadd.f32 %v1606_v60, %v222_v52  ;;  %v1253_v55 = vpop.f32.mrb[10].mxu0  ;;  %1288 = vmatprep.mubr.msk.bf16.mxu1 %vm412_vm2, %v351_v48  ;;  %v361_v59 = vpack.c.bf16 %v342_v53, %v341_v46  ;;  %v1272_v61 = vpop.f32.mrb[8].mxu1 }
  0xf2   :  { %v234_v57 = vadd.f32 %v1253_v55, %v1606_v60  ;;  %v225_v58 = vpop.f32.mrb[11].mxu0  ;;  %1289 = vmatmul.mubr.msk.bf16.gmra.mrb[16].mxu1 %vm412_vm2, %v352_v45  ;;  %v311_v63 = vadd.f32 %v1272_v61, %v1606_v60  ;;  %v302_v0 = vpop.f32.mrb[9].mxu1  ;;  %v327_v1 = vmax.f32 %v231_v51, 0.0 }
  0xf3   :  { %v226_v62 = vadd.f32 %v1606_v60, %v225_v58  ;;  %v303_v3 = vadd.f32 %v1606_v60, %v302_v0  ;;  %v1273_v4 = vpop.f32.mrb[10].mxu1  ;;  %v325_v5 = vmax.f32 %v223_v54, 0.0 }
  0xf4   :  { %v328_v2 = vmax.f32 %v234_v57, 0.0  ;;  %v347_v7 = vmax.f32 %v311_v63, 0.0  ;;  %v314_v8 = vadd.f32 %v1273_v4, %v1606_v60  ;;  %v305_v9 = vpop.f32.mrb[11].mxu1 }
  0xf5   :  { %v326_v6 = vmax.f32 %v226_v62, 0.0  ;;  %v345_v11 = vmax.f32 %v303_v3, 0.0  ;;  %v306_v12 = vadd.f32 %v1606_v60, %v305_v9 }
  0xf6   :  { %v354_v10 = vpack.c.bf16 %v328_v2, %v327_v1  ;;  %v348_v15 = vmax.f32 %v314_v8, 0.0 }
  0xf7   :  { %v353_v13 = vpack.c.bf16 %v326_v6, %v325_v5  ;;  %v1256_v14 = vpop.f32.mrb[12].mxu0  ;;  %v346_v18 = vmax.f32 %v306_v12, 0.0 }
  0xf8   :  { %v247_v16 = vadd.f32 %v1256_v14, %v1606_v60  ;;  %v238_v17 = vpop.f32.mrb[13].mxu0  ;;  %v364_v21 = vpack.c.bf16 %v348_v15, %v347_v7 }
  0xf9   :  { %v239_v19 = vadd.f32 %v1606_v60, %v238_v17  ;;  %v1257_v20 = vpop.f32.mrb[14].mxu0  ;;  %1292 = vmatprep.mubr.msk.bf16.mxu1 %vm412_vm2, %v353_v13  ;;  %v363_v24 = vpack.c.bf16 %v346_v18, %v345_v11 }
  0xfa   :  { %v250_v22 = vadd.f32 %v1257_v20, %v1606_v60  ;;  %v241_v23 = vpop.f32.mrb[15].mxu0  ;;  %1293 = vmatmul.mubr.msk.bf16.gmra.mrb[20].mxu1 %vm412_vm2, %v354_v10  ;;  %v331_v26 = vmax.f32 %v247_v16, 0.0 }
  0xfb   :  { %v242_v25 = vadd.f32 %v1606_v60, %v241_v23  ;;  %v329_v29 = vmax.f32 %v239_v19, 0.0 }
  0xfc   :  { %v332_v27 = vmax.f32 %v250_v22, 0.0 }
  0xfd   :  { %v330_v30 = vmax.f32 %v242_v25, 0.0 }
  0xfe   :  { %v356_v32 = vpack.c.bf16 %v332_v27, %v331_v26 }
  0xff   :  { %v355_v33 = vpack.c.bf16 %v330_v30, %v329_v29  ;;  %v1260_v34 = vpop.f32.mrb[16].mxu0 }
 0x100   :  { %v263_v35 = vadd.f32 %v1260_v34, %v1606_v60  ;;  %v254_v36 = vpop.f32.mrb[17].mxu0 }
 0x101   :  { %v255_v37 = vadd.f32 %v1606_v60, %v254_v36  ;;  %v1261_v38 = vpop.f32.mrb[18].mxu0  ;;  %1296 = vmatprep.mubr.msk.bf16.mxu1 %vm412_vm2, %v355_v33 }
 0x102   :  { %v266_v39 = vadd.f32 %v1261_v38, %v1606_v60  ;;  %v257_v40 = vpop.f32.mrb[19].mxu0  ;;  %1297 = vmatmul.mubr.msk.bf16.gmra.mrb[24].mxu1 %vm412_vm2, %v356_v32  ;;  %v335_v42 = vmax.f32 %v263_v35, 0.0 }
 0x103   :  { %v258_v41 = vadd.f32 %v1606_v60, %v257_v40  ;;  %v333_v44 = vmax.f32 %v255_v37, 0.0  ;;  %v1668_v60 = vld [vmem:[%s1820_s4] ss:$0 sm:$0xff] }
 0x104   :  { %v336_v43 = vmax.f32 %v266_v39, 0.0 }
 0x105   :  { %v334_v45 = vmax.f32 %v258_v41, 0.0 }
 0x106   :  { %v358_v46 = vpack.c.bf16 %v336_v43, %v335_v42 }
 0x107   :  { %v357_v47 = vpack.c.bf16 %v334_v45, %v333_v44 }
 0x109   :  { %1300 = vmatprep.mubr.msk.bf16.mxu1 %vm412_vm2, %v357_v47 }
 0x10a   :  { %1301 = vmatmul.mubr.msk.bf16.gmra.mrb[28].mxu1 %vm412_vm2, %v358_v46 }
 0x10b   :  { %1304 = vmatprep.mubr.msk.bf16.mxu1 %vm412_vm2, %v1623_v31 }
 0x112   :  { %1305 = vmatmul.mubr.msk.bf16.gmra.mrb[32].mxu1 %vm412_vm2, %v1619_v28 }
 0x113   :  { %1308 = vmatprep.mubr.msk.bf16.mxu1 %vm412_vm2, %v361_v59 }
 0x11a   :  { %1309 = vmatmul.mubr.msk.bf16.gmra.mrb[36].mxu1 %vm412_vm2, %v1633_v56 }
 0x11b   :  { %1312 = vmatprep.mubr.msk.bf16.mxu1 %vm412_vm2, %v363_v24 }
 0x122   :  { %1313 = vmatmul.mubr.msk.bf16.gmra.mrb[40].mxu1 %vm412_vm2, %v364_v21 }
 0x1bd   :  { %v1286_v48 = vpop.f32.mrb[12].mxu1 }
 0x1be   :  { %v504_v31 = vadd.f32 %v1286_v48, %v1668_v60  ;;  %v495_v49 = vpop.f32.mrb[13].mxu1 }
 0x1bf   :  { %v496_v28 = vadd.f32 %v1668_v60, %v495_v49  ;;  %v1287_v50 = vpop.f32.mrb[14].mxu1 }
 0x1c0   :  { %v507_v51 = vadd.f32 %v1287_v50, %v1668_v60  ;;  %v498_v52 = vpop.f32.mrb[15].mxu1  ;;  %v624_v54 = vmax.f32 %v504_v31, 0.0 }
 0x1c1   :  { %v499_v53 = vadd.f32 %v1668_v60, %v498_v52  ;;  %v622_v56 = vmax.f32 %v496_v28, 0.0 }
 0x1c2   :  { %v625_v55 = vmax.f32 %v507_v51, 0.0 }
 0x1c3   :  { %v623_v57 = vmax.f32 %v499_v53, 0.0 }
 0x1c4   :  { %v655_v58 = vpack.c.bf16 %v625_v55, %v624_v54 }
 0x1c5   :  { %v654_v59 = vpack.c.bf16 %v623_v57, %v622_v56  ;;  %v1290_v61 = vpop.f32.mrb[16].mxu1 }
 0x1c6   :  { %v520_v62 = vadd.f32 %v1290_v61, %v1668_v60  ;;  %v511_v63 = vpop.f32.mrb[17].mxu1 }
 0x1c7   :  { %v512_v0 = vadd.f32 %v1668_v60, %v511_v63  ;;  %v1291_v1 = vpop.f32.mrb[18].mxu1  ;;  %1322 = vmatprep.mubr.msk.bf16.mxu0 %vm697_vm3, %v654_v59 }
 0x1c8   :  { %v523_v2 = vadd.f32 %v1291_v1, %v1668_v60  ;;  %v514_v3 = vpop.f32.mrb[19].mxu1  ;;  %1323 = vmatmul.mubr.msk.bf16.vlgmr.msra.gmra.mrb[20].mxu0 %vm697_vm3, %v655_v58  ;;  %v628_v5 = vmax.f32 %v520_v62, 0.0 }
 0x1c9   :  { %v515_v4 = vadd.f32 %v1668_v60, %v514_v3  ;;  %v626_v7 = vmax.f32 %v512_v0, 0.0 }
 0x1ca   :  { %v629_v6 = vmax.f32 %v523_v2, 0.0 }
 0x1cb   :  { %v627_v8 = vmax.f32 %v515_v4, 0.0 }
 0x1cc   :  { %v657_v9 = vpack.c.bf16 %v629_v6, %v628_v5 }
 0x1cd   :  { %v656_v10 = vpack.c.bf16 %v627_v8, %v626_v7  ;;  %v1294_v11 = vpop.f32.mrb[20].mxu1 }
 0x1ce   :  { %v536_v12 = vadd.f32 %v1294_v11, %v1668_v60  ;;  %v527_v13 = vpop.f32.mrb[21].mxu1 }
 0x1cf   :  { %v528_v14 = vadd.f32 %v1668_v60, %v527_v13  ;;  %v1295_v15 = vpop.f32.mrb[22].mxu1  ;;  %1326 = vmatprep.mubr.msk.bf16.mxu0 %vm697_vm3, %v656_v10 }
 0x1d0   :  { %v539_v16 = vadd.f32 %v1295_v15, %v1668_v60  ;;  %v530_v17 = vpop.f32.mrb[23].mxu1  ;;  %1327 = vmatmul.mubr.msk.bf16.gmra.mrb[24].mxu0 %vm697_vm3, %v657_v9  ;;  %v632_v19 = vmax.f32 %v536_v12, 0.0 }
 0x1d1   :  { %v531_v18 = vadd.f32 %v1668_v60, %v530_v17  ;;  %v630_v21 = vmax.f32 %v528_v14, 0.0 }
 0x1d2   :  { %v633_v20 = vmax.f32 %v539_v16, 0.0 }
 0x1d3   :  { %v631_v22 = vmax.f32 %v531_v18, 0.0 }
 0x1d4   :  { %v659_v23 = vpack.c.bf16 %v633_v20, %v632_v19 }
 0x1d5   :  { %v658_v24 = vpack.c.bf16 %v631_v22, %v630_v21  ;;  %v1298_v25 = vpop.f32.mrb[24].mxu1 }
 0x1d6   :  { %v552_v26 = vadd.f32 %v1298_v25, %v1668_v60  ;;  %v543_v27 = vpop.f32.mrb[25].mxu1 }
 0x1d7   :  { %v544_v29 = vadd.f32 %v1668_v60, %v543_v27  ;;  %v1299_v30 = vpop.f32.mrb[26].mxu1  ;;  %1330 = vmatprep.mubr.msk.bf16.mxu0 %vm697_vm3, %v658_v24 }
 0x1d8   :  { %v555_v32 = vadd.f32 %v1299_v30, %v1668_v60  ;;  %v546_v33 = vpop.f32.mrb[27].mxu1  ;;  %1331 = vmatmul.mubr.msk.bf16.gmra.mrb[28].mxu0 %vm697_vm3, %v659_v23  ;;  %v636_v35 = vmax.f32 %v552_v26, 0.0 }
 0x1d9   :  { %v547_v34 = vadd.f32 %v1668_v60, %v546_v33  ;;  %v634_v37 = vmax.f32 %v544_v29, 0.0 }
 0x1da   :  { %v637_v36 = vmax.f32 %v555_v32, 0.0 }
 0x1db   :  { %v635_v38 = vmax.f32 %v547_v34, 0.0  ;;  %v1721_v34 = vld [vmem:[%s1823_s7] sm:$0x1] }
 0x1dc   :  { %v661_v39 = vpack.c.bf16 %v637_v36, %v636_v35  ;;  %1236 = vmatprep.mubr.msk.bf16.mxu1 %vm970_vm4, %v1721_v34  ;;  %v960_v35 = vld [vmem:[#allocation2] sm:$0x1]  ;;  %v1405_v36 = vmov 0  }
 0x1dd   :  { %v660_v40 = vpack.c.bf16 %v635_v38, %v634_v37  ;;  %v1302_v41 = vpop.f32.mrb[28].mxu1  ;;  %1370 = vset.pattern.permute.xlu0 %v1405_v36 }
 0x1de   :  { %v568_v42 = vadd.f32 %v1302_v41, %v1668_v60  ;;  %v559_v43 = vpop.f32.mrb[29].mxu1  ;;  %963 = vperm.xlu0 %1370, %v960_v35  }
 0x1df   :  { %v560_v44 = vadd.f32 %v1668_v60, %v559_v43  ;;  %v1303_v45 = vpop.f32.mrb[30].mxu1  ;;  %1334 = vmatprep.mubr.msk.bf16.mxu0 %vm697_vm3, %v660_v40 }
 0x1e0   :  { %v571_v46 = vadd.f32 %v1303_v45, %v1668_v60  ;;  %v562_v47 = vpop.f32.mrb[31].mxu1  ;;  %1335 = vmatmul.mubr.msk.bf16.gmra.mrb[32].mxu0 %vm697_vm3, %v661_v39  ;;  %v640_v31 = vmax.f32 %v568_v42, 0.0 }
 0x1e1   :  { %v563_v48 = vadd.f32 %v1668_v60, %v562_v47  ;;  %v638_v28 = vmax.f32 %v560_v44, 0.0 }
 0x1e2   :  { %v641_v49 = vmax.f32 %v571_v46, 0.0 }
 0x1e3   :  { %v639_v50 = vmax.f32 %v563_v48, 0.0 }
 0x1e4   :  { %v663_v51 = vpack.c.bf16 %v641_v49, %v640_v31 }
 0x1e5   :  { %v662_v52 = vpack.c.bf16 %v639_v50, %v638_v28  ;;  %v1306_v53 = vpop.f32.mrb[32].mxu1 }
 0x1e6   :  { %v584_v54 = vadd.f32 %v1306_v53, %v1668_v60  ;;  %v575_v55 = vpop.f32.mrb[33].mxu1 }
 0x1e7   :  { %v576_v56 = vadd.f32 %v1668_v60, %v575_v55  ;;  %v1307_v57 = vpop.f32.mrb[34].mxu1  ;;  %1338 = vmatprep.mubr.msk.bf16.mxu0 %vm697_vm3, %v662_v52 }
 0x1e8   :  { %v644_v58 = vmax.f32 %v584_v54, 0.0  ;;  %v587_v59 = vadd.f32 %v1307_v57, %v1668_v60  ;;  %v578_v61 = vpop.f32.mrb[35].mxu1  ;;  %1339 = vmatmul.mubr.msk.bf16.gmra.mrb[36].mxu0 %vm697_vm3, %v663_v51 }
 0x1e9   :  { %v642_v62 = vmax.f32 %v576_v56, 0.0  ;;  %v579_v63 = vadd.f32 %v1668_v60, %v578_v61 }
 0x1ea   :  { %v645_v0 = vmax.f32 %v587_v59, 0.0 }
 0x1eb   :  { %v643_v1 = vmax.f32 %v579_v63, 0.0 }
 0x1ec   :  { %v665_v2 = vpack.c.bf16 %v645_v0, %v644_v58 }
 0x1ed   :  { %v664_v3 = vpack.c.bf16 %v643_v1, %v642_v62  ;;  %v1310_v4 = vpop.f32.mrb[36].mxu1 }
 0x1ee   :  { %v600_v5 = vadd.f32 %v1310_v4, %v1668_v60  ;;  %v591_v6 = vpop.f32.mrb[37].mxu1 }
 0x1ef   :  { %1342 = vmatprep.mubr.msk.bf16.mxu0 %vm697_vm3, %v664_v3  ;;  %v592_v7 = vadd.f32 %v1668_v60, %v591_v6  ;;  %v1311_v8 = vpop.f32.mrb[38].mxu1 }
 0x1f0   :  { %1343 = vmatmul.mubr.msk.bf16.gmra.mrb[40].mxu0 %vm697_vm3, %v665_v2  ;;  %v648_v9 = vmax.f32 %v600_v5, 0.0  ;;  %v603_v10 = vadd.f32 %v1311_v8, %v1668_v60  ;;  %v594_v11 = vpop.f32.mrb[39].mxu1 }
 0x1f1   :  { %v646_v12 = vmax.f32 %v592_v7, 0.0  ;;  %v595_v13 = vadd.f32 %v1668_v60, %v594_v11 }
 0x1f2   :  { %v649_v14 = vmax.f32 %v603_v10, 0.0 }
 0x1f3   :  { %v647_v15 = vmax.f32 %v595_v13, 0.0 }
 0x1f4   :  { %v667_v16 = vpack.c.bf16 %v649_v14, %v648_v9 }
 0x1f5   :  { %v666_v17 = vpack.c.bf16 %v647_v15, %v646_v12  ;;  %v1314_v18 = vpop.f32.mrb[40].mxu1 }
 0x1f6   :  { %v616_v19 = vadd.f32 %v1314_v18, %v1668_v60  ;;  %v607_v20 = vpop.f32.mrb[41].mxu1 }
 0x1f7   :  { %1346 = vmatprep.mubr.msk.bf16.mxu0 %vm697_vm3, %v666_v17  ;;  %v608_v21 = vadd.f32 %v1668_v60, %v607_v20  ;;  %v1315_v22 = vpop.f32.mrb[42].mxu1 }
 0x1f8   :  { %1347 = vmatmul.mubr.msk.bf16.gmra.mrb[44].mxu0 %vm697_vm3, %v667_v16  ;;  %v652_v23 = vmax.f32 %v616_v19, 0.0  ;;  %v619_v24 = vadd.f32 %v1315_v22, %v1668_v60  ;;  %v610_v25 = vpop.f32.mrb[43].mxu1 }
 0x1f9   :  { %v650_v26 = vmax.f32 %v608_v21, 0.0  ;;  %v611_v27 = vadd.f32 %v1668_v60, %v610_v25  ;;  %v1728_v60 = vld [vmem:[%s1822_s6] ss:$0 sm:$0xff]  ;;  %s1407_s6 = smov [#allocation3]  }
 0x1fa   :  { %v653_v29 = vmax.f32 %v619_v24, 0.0  ;;  %s1092_s7 = sshll.u32 %s1407_s6, 4  ;;  %s1093_s7 = int_to_ptr.vmem [resolvable:$true] %s1092_s7 }
 0x1fb   :  { %v651_v30 = vmax.f32 %v611_v27, 0.0  ;;  %s1381_s27 = scalar_lea.vmem %s1093_s7, 32  ;;  %p1386_p1 = scmp.lt.s32.totalorder %s1093_s7, %s1093_s7 }
 0x1fc   :  { %v669_v32 = vpack.c.bf16 %v653_v29, %v652_v23  ;;  %p1382_p0 = scmp.ne.s32.totalorder %s1093_s7, %s1381_s27  ;;  %p1387_p2 = scmp.lt.s32.totalorder %s1381_s27, %s1381_s27 }
 0x1fd   :  { %v668_v33 = vpack.c.bf16 %v651_v30, %v650_v26 }
 0x1fe   :  { %p1388_p3 = por %p1387_p2, %p1386_p1 }
 0x1ff   :  { %1350 = vmatprep.mubr.msk.bf16.mxu0 %vm697_vm3, %v668_v33 }
 0x200   :  { %1351 = vmatmul.mubr.msk.bf16.gmra.mrb[48].mxu0 %vm697_vm3, %v669_v32  ;;  %p1389_p4 = pnand %p1388_p3, %p1382_p0 }
 0x29b   :  { %v1324_v37 = vpop.f32.mrb[20].mxu0 }
 0x29c   :  { %v793_v38 = vadd.f32 %v1324_v37, %v1728_v60  ;;  %v784_v39 = vpop.f32.mrb[21].mxu0 }
 0x29d   :  { %v785_v40 = vadd.f32 %v1728_v60, %v784_v39  ;;  %v1325_v41 = vpop.f32.mrb[22].mxu0 }
 0x29e   :  { %v796_v42 = vadd.f32 %v1325_v41, %v1728_v60  ;;  %v787_v43 = vpop.f32.mrb[23].mxu0  ;;  %v913_v45 = vmax.f32 %v793_v38, 0.0 }
 0x29f   :  { %v788_v44 = vadd.f32 %v1728_v60, %v787_v43  ;;  %v911_v47 = vmax.f32 %v785_v40, 0.0 }
 0x2a0   :  { %v914_v46 = vmax.f32 %v796_v42, 0.0 }
 0x2a1   :  { %v912_v48 = vmax.f32 %v788_v44, 0.0 }
 0x2a2   :  { %v1734_v31 = vpack.c.bf16 %v914_v46, %v913_v45 }
 0x2a3   :  { %v1736_v49 = vpack.c.bf16 %v912_v48, %v911_v47  ;;  %v1328_v28 = vpop.f32.mrb[24].mxu0 }
 0x2a4   :  { %v809_v50 = vadd.f32 %v1328_v28, %v1728_v60  ;;  %v800_v51 = vpop.f32.mrb[25].mxu0 }
 0x2a5   :  { %v801_v52 = vadd.f32 %v1728_v60, %v800_v51  ;;  %v1329_v53 = vpop.f32.mrb[26].mxu0 }
 0x2a6   :  { %v812_v54 = vadd.f32 %v1329_v53, %v1728_v60  ;;  %v803_v55 = vpop.f32.mrb[27].mxu0  ;;  %v917_v57 = vmax.f32 %v809_v50, 0.0  ;;  %v975_v50 = vsel %vm970_vm4, %v1736_v49, 0  ;;  %v978_v49 = vsel %vm970_vm4, %v1734_v31, 0 }
 0x2a7   :  { %v804_v56 = vadd.f32 %v1728_v60, %v803_v55  ;;  %v915_v59 = vmax.f32 %v801_v52, 0.0 }
 0x2a8   :  { %v918_v58 = vmax.f32 %v812_v54, 0.0 }
 0x2a9   :  { %v916_v61 = vmax.f32 %v804_v56, 0.0 }
 0x2aa   :  { %v1742_v62 = vpack.c.bf16 %v918_v58, %v917_v57 }
 0x2ab   :  { %v1744_v63 = vpack.c.bf16 %v916_v61, %v915_v59  ;;  %v1332_v0 = vpop.f32.mrb[28].mxu0 }
 0x2ac   :  { %v825_v1 = vadd.f32 %v1332_v0, %v1728_v60  ;;  %v816_v2 = vpop.f32.mrb[29].mxu0 }
 0x2ad   :  { %v817_v3 = vadd.f32 %v1728_v60, %v816_v2  ;;  %v1333_v4 = vpop.f32.mrb[30].mxu0 }
 0x2ae   :  { %v828_v5 = vadd.f32 %v1333_v4, %v1728_v60  ;;  %v819_v6 = vpop.f32.mrb[31].mxu0  ;;  %v921_v8 = vmax.f32 %v825_v1, 0.0 }
 0x2af   :  { %v820_v7 = vadd.f32 %v1728_v60, %v819_v6  ;;  %v919_v10 = vmax.f32 %v817_v3, 0.0 }
 0x2b0   :  { %v922_v9 = vmax.f32 %v828_v5, 0.0 }
 0x2b1   :  { %v920_v11 = vmax.f32 %v820_v7, 0.0 }
 0x2b2   :  { %v1750_v12 = vpack.c.bf16 %v922_v9, %v921_v8 }
 0x2b3   :  { %v1752_v13 = vpack.c.bf16 %v920_v11, %v919_v10  ;;  %v1336_v14 = vpop.f32.mrb[32].mxu0 }
 0x2b4   :  { %v841_v15 = vadd.f32 %v1336_v14, %v1728_v60  ;;  %v832_v16 = vpop.f32.mrb[33].mxu0 }
 0x2b5   :  { %v833_v17 = vadd.f32 %v1728_v60, %v832_v16  ;;  %v1337_v18 = vpop.f32.mrb[34].mxu0 }
 0x2b6   :  { %v844_v19 = vadd.f32 %v1337_v18, %v1728_v60  ;;  %v835_v20 = vpop.f32.mrb[35].mxu0  ;;  %v925_v22 = vmax.f32 %v841_v15, 0.0 }
 0x2b7   :  { %v836_v21 = vadd.f32 %v1728_v60, %v835_v20  ;;  %v923_v24 = vmax.f32 %v833_v17, 0.0  ;;  %v981_v17 = vsel %vm970_vm4, %v1744_v63, 0  ;;  %v984_v63 = vsel %vm970_vm4, %v1742_v62, 0 }
 0x2b8   :  { %v926_v23 = vmax.f32 %v844_v19, 0.0 }
 0x2b9   :  { %v924_v25 = vmax.f32 %v836_v21, 0.0 }
 0x2ba   :  { %v1758_v26 = vpack.c.bf16 %v926_v23, %v925_v22 }
 0x2bb   :  { %v1760_v27 = vpack.c.bf16 %v924_v25, %v923_v24  ;;  %v1340_v29 = vpop.f32.mrb[36].mxu0 }
 0x2bc   :  { %v857_v30 = vadd.f32 %v1340_v29, %v1728_v60  ;;  %v848_v32 = vpop.f32.mrb[37].mxu0  ;;  %v996_v62 = vsel %vm970_vm4, %v1758_v26, 0 }
 0x2bd   :  { %v849_v33 = vadd.f32 %v1728_v60, %v848_v32  ;;  %v1341_v35 = vpop.f32.mrb[38].mxu0 }
 0x2be   :  { %v860_v36 = vadd.f32 %v1341_v35, %v1728_v60  ;;  %v851_v37 = vpop.f32.mrb[39].mxu0  ;;  %v929_v39 = vmax.f32 %v857_v30, 0.0  ;;  %v990_v35 = vsel %vm970_vm4, %v1750_v12, 0  ;;  %v964_v12 = vpop.permute.xlu0 %963 }
 0x2bf   :  { %v852_v38 = vadd.f32 %v1728_v60, %v851_v37  ;;  %v927_v41 = vmax.f32 %v849_v33, 0.0  ;;  %v987_v33 = vsel %vm970_vm4, %v1752_v13, 0  ;;  %v966_v13 = vlaneseq }
 0x2c0   :  { %v930_v40 = vmax.f32 %v860_v36, 0.0 }
 0x2c1   :  { %v928_v42 = vmax.f32 %v852_v38, 0.0  ;;  %v967_v36 = vshrl.u32 %v966_v13, 7  ;;  %v1406_v38 = vmov 1966171168   ;;  %vm1083_vm5 = vcmp.lt.s32.totalorder %v966_v13, 256 }
 0x2c2   :  { %v953_v43 = vpack.c.bf16 %v930_v40, %v929_v39  ;;  %v1067_v39 = vunpack.c.l.s4 %v1406_v38 }
 0x2c3   :  { %v952_v44 = vpack.c.bf16 %v928_v42, %v927_v41  ;;  %v1344_v45 = vpop.f32.mrb[40].mxu0  ;;  %v968_v37 = vsub.s32 0, %v967_v36 }
 0x2c4   :  { %v873_v46 = vadd.f32 %v1344_v45, %v1728_v60  ;;  %v864_v47 = vpop.f32.mrb[41].mxu0  ;;  %v1068_v41 = vunpack.c.0.s8 %v1067_v39 }
 0x2c5   :  { %v865_v48 = vadd.f32 %v1728_v60, %v864_v47  ;;  %v1345_v28 = vpop.f32.mrb[42].mxu0  ;;  %1359 = vmatprep.subr.msk.bf16.mxu1 %vm970_vm4, %v952_v44  ;;  %v969_v40 = vrot.slane %v964_v12, %v968_v37 }
 0x2c6   :  { %v876_v51 = vadd.f32 %v1345_v28, %v1728_v60  ;;  %v867_v52 = vpop.f32.mrb[43].mxu0  ;;  %1221 = vmatpush3.bf16.xpose.msra.mxu1 %v975_v50  ;;  %v933_v54 = vmax.f32 %v873_v46, 0.0  ;;  %v1071_v45 = vsub.s32 %v1068_v41, %v967_v36 }
 0x2c7   :  { %v868_v53 = vadd.f32 %v1728_v60, %v867_v52  ;;  %1360 = vmatprep.subr.msk.bf16.mxu1 %vm970_vm4, %v953_v43  ;;  %v931_v56 = vmax.f32 %v865_v48, 0.0 }
 0x2c8   :  { %v934_v55 = vmax.f32 %v876_v51, 0.0 }
 0x2c9   :  { %v932_v57 = vmax.f32 %v868_v53, 0.0 }
 0x2ca   :  { %v955_v58 = vpack.c.bf16 %v934_v55, %v933_v54 }
 0x2cb   :  { %v954_v59 = vpack.c.bf16 %v932_v57, %v931_v56  ;;  %v1348_v61 = vpop.f32.mrb[44].mxu0 }
 0x2cc   :  { %v889_v0 = vadd.f32 %v1348_v61, %v1728_v60  ;;  %v880_v1 = vpop.f32.mrb[45].mxu0 }
 0x2cd   :  { %v881_v2 = vadd.f32 %v1728_v60, %v880_v1  ;;  %v1349_v3 = vpop.f32.mrb[46].mxu0 }
 0x2ce   :  { %1223 = vmatpush3.bf16.xpose.msra.mxu1 %v978_v49  ;;  %v937_v4 = vmax.f32 %v889_v0, 0.0  ;;  %v892_v5 = vadd.f32 %v1349_v3, %v1728_v60  ;;  %v883_v6 = vpop.f32.mrb[47].mxu0 }
 0x2cf   :  { %1361 = vmatprep.subr.msk.bf16.mxu1 %vm970_vm4, %v954_v59  ;;  %v935_v7 = vmax.f32 %v881_v2, 0.0  ;;  %v884_v8 = vadd.f32 %v1728_v60, %v883_v6 }
 0x2d0   :  { %v938_v9 = vmax.f32 %v892_v5, 0.0 }
 0x2d1   :  { %v936_v10 = vmax.f32 %v884_v8, 0.0 }
 0x2d2   :  { %v957_v11 = vpack.c.bf16 %v938_v9, %v937_v4 }
 0x2d3   :  { %v956_v14 = vpack.c.bf16 %v936_v10, %v935_v7  ;;  %v1352_v15 = vpop.f32.mrb[48].mxu0 }
 0x2d4   :  { %v905_v31 = vadd.f32 %v1352_v15, %v1728_v60  ;;  %v896_v16 = vpop.f32.mrb[49].mxu0 }
 0x2d5   :  { %v897_v18 = vadd.f32 %v1728_v60, %v896_v16  ;;  %v1353_v19 = vpop.f32.mrb[50].mxu0 }
 0x2d6   :  { %1225 = vmatpush3.bf16.xpose.msra.mxu1 %v981_v17  ;;  %v941_v20 = vmax.f32 %v905_v31, 0.0  ;;  %v908_v21 = vadd.f32 %v1353_v19, %v1728_v60  ;;  %v899_v22 = vpop.f32.mrb[51].mxu0 }
 0x2d7   :  { %1362 = vmatprep.subr.msk.bf16.mxu1 %vm970_vm4, %v955_v58  ;;  %v939_v23 = vmax.f32 %v897_v18, 0.0  ;;  %v900_v24 = vadd.f32 %v1728_v60, %v899_v22  ;;  %v993_v60 = vsel %vm970_vm4, %v1760_v27, 0 }
 0x2d8   :  { %v942_v25 = vmax.f32 %v908_v21, 0.0 }
 0x2d9   :  { %v940_v29 = vmax.f32 %v900_v24, 0.0 }
 0x2da   :  { %v959_v30 = vpack.c.bf16 %v942_v25, %v941_v20 }
 0x2db   :  { %v958_v32 = vpack.c.bf16 %v940_v29, %v939_v23 }
 0x2de   :  { %1227 = vmatpush3.bf16.xpose.msra.mxu1 %v984_v63 }
 0x2df   :  { %1363 = vmatprep.subr.msk.bf16.mxu1 %vm970_vm4, %v956_v14 }
 0x2e6   :  { %1229 = vmatpush3.bf16.xpose.msra.mxu1 %v987_v33 }
 0x2e7   :  { %1364 = vmatprep.subr.msk.bf16.mxu1 %vm970_vm4, %v957_v11 }
 0x2ee   :  { %1231 = vmatpush3.bf16.xpose.msra.mxu1 %v990_v35 }
 0x2ef   :  { %1365 = vmatprep.subr.msk.bf16.mxu1 %vm970_vm4, %v958_v32 }
 0x2f6   :  { %1233 = vmatpush3.bf16.xpose.msra.mxu1 %v993_v60 }
 0x2f7   :  { %1366 = vmatprep.subr.msk.bf16.mxu1 %vm970_vm4, %v959_v30 }
 0x2fe   :  { %1235 = vmatpush3.bf16.xpose.msra.mxu1 %v996_v62 }
 0x305   :  { %1237 = vmatmul.mubr.msk.bf16.vlgmr.msra.gmra.mrb[44].mxu1 %vm970_vm4, %v1721_v34 }
 0x3d8   :  { %v1056_v42 = vpop.f32.mrb[44].mxu1 }
 0x3d9   :  { %v1057_v27 = vadd.f32 %v1056_v42, %v969_v40  ;;  %v1058_v43 = vpop.f32.mrb[45].mxu1 }
 0x3da   :  { %v1059_v44 = vadd.f32 %v1058_v43, %v969_v40  ;;  %v1060_v46 = vpop.f32.mrb[46].mxu1 }
 0x3db   :  { %v1061_v47 = vpop.f32.mrb[47].mxu1 }
 0x3dc   :  { %v1065_v26 = vcombine.low %v1057_v27, %v1059_v44 }
 0x3de   :  { %v1072_v48 = vrot.slane %v1065_v26, %v1071_v45 }
 0x3e0   :  { %v1079_v34 = vrot.slane %v1072_v48, %v1071_v45 }
 0x3e2   :  { %1085 = vst.msk [vmem:[#allocation3] sm:$0x3] %vm1083_vm5, %v1079_v34 }
 0x3e3   :  { %1392 = shalt.err (!%p1389_p4)
}
 0x3e4   :  { %s1393_s30 = scalar_lea.hbm %s1825_s9, 32 }
 0x3e5   :  { %p1394_p5 = scmp.ne.s32.totalorder %s1825_s9, %s1393_s30  ;;  %p1397_p6 = scmp.lt.u32.totalorder %s1393_s30, %s1825_s9 }
 0x3e7   :  { %p1399_p7 = pnand %p1397_p6, %p1394_p5 }
 0x3e9   :  { %1402 = shalt.err (!%p1399_p7)
}
 0x3ea   :  { %1095 = dma.vmem_to_hbm [thread:$0]  %s1093_s7, 32, %s1825_s9, [#allocation4]  }
 0x3eb   :  { %1403 = dma.done.wait [#allocation4], 32  }
 0x3ec   :  { %1404 = vsyncadd [#allocation4], 4294967264 }
 0x3ed   :  { %1099 = vsyncpa [#allocation4], 1 }

</bundles_post_ra>
